<compile_context>
chip_gen: v5e
topology: v5e:2x2
jax: 0.10.0
libtpu: 0.0.40
codegen_flags: <defaults>
</compile_context>

<pallas_src>
import jax
import jax.numpy as jnp
from jax.experimental import pallas as pl
from jax.experimental.pallas import tpu as pltpu


def _make_scale_prediction_kernel(bt, cin_p, cout1, cout2, Wp, hwp_pad):
    taps = [(dy, dx) for dy in range(3) for dx in range(3)]

    def kernel(x_ref, w1_ref, shift_ref, w2_ref, b2_ref, o_ref, col_ref):
        # x_ref    : (bt, cin_p, flat)       bf16  padded NCHW, spatial flattened
        # w1_ref   : (cout1, 9*cin_p)        bf16  3x3 conv weights, BN scale folded
        # shift_ref: (cout1, 1)              f32   folded eval-mode BN shift
        # w2_ref   : (cout2, cout1)          bf16  1x1 conv weights
        # b2_ref   : (cout2, 1)              f32   1x1 conv bias
        # o_ref    : (1, cout2, bt*hwp_pad)  f32
        # col_ref  : (9*cin_p, bt*hwp_pad)   bf16  im2col scratch

        # Build one batched, lane-aligned im2col for all bt images in this step.
        # Each 3x3 tap is a single contiguous slice of the zero-padded,
        # flattened image; per-image lane stride hwp_pad is 128-aligned, and
        # cin_p is a multiple of 8, so every copy is whole-sublane/whole-lane.
        for bi in range(bt):
            base = bi * hwp_pad
            for t, (dy, dx) in enumerate(taps):
                off = dy * Wp + dx
                col_ref[t * cin_p:(t + 1) * cin_p, base:base + hwp_pad] = (
                    x_ref[bi, :, off:off + hwp_pad])

        # 3x3 conv (+ folded BN scale) as ONE fused MXU matmul over all images:
        # (cout1, 9*cin_p) @ (9*cin_p, bt*hwp_pad), f32 accumulation.
        y = jnp.dot(w1_ref[...], col_ref[...],
                    preferred_element_type=jnp.float32)
        y = y + shift_ref[...]                        # folded BN shift
        y = jnp.where(y > 0, y, 0.1 * y)              # LeakyReLU(0.1)

        # 1x1 conv with bias, again a single matmul over all images.
        out = jnp.dot(w2_ref[...], y.astype(jnp.bfloat16),
                      preferred_element_type=jnp.float32) + b2_ref[...]
        o_ref[0] = out.astype(o_ref.dtype)

    return kernel


def _pick_batch_tile(B, max_tile=8):
    # Prefer >= 2 grid steps so both TensorCores get work on v7x; within that
    # constraint pick the largest divisor of B (widest fused-matmul N and fewer
    # per-step overheads on single-TC v5e/v6e).
    divisors = [t for t in range(1, min(B, max_tile) + 1) if B % t == 0]
    pref = [t for t in divisors if B // t >= 2]
    return max(pref) if pref else max(divisors)


def scale_prediction(x_nchw, params, num_classes, eps=1e-5, batch_tile=None):
    B, Cin, H, W = x_nchw.shape
    cout1 = params["w1"].shape[0]
    cout2 = params["w2"].shape[0]
    assert params["w1"].shape[1] == Cin
    assert cout2 == 3 * (5 + num_classes)

    # --- layout parameters ----------------------------------------------------
    Wp = W + 2                                 # width incl. (1,1) zero pad
    hwp = H * Wp                               # valid flattened extent / image
    hwp_pad = -(-hwp // 128) * 128             # lane-pad to a multiple of 128
    cin_p = -(-Cin // 8) * 8                   # sublane-pad input channels
    K = 9 * cin_p
    max_off = 2 * Wp + 2                       # largest 3x3 tap offset
    H_tot = -(-(max_off + hwp_pad) // Wp)      # rows so every tap slice fits
    flat = H_tot * Wp

    bt = batch_tile if batch_tile is not None else _pick_batch_tile(B)
    assert B % bt == 0
    n_lanes = bt * hwp_pad

    # --- operand prep (wrapper-side, constant-time) -----------------------------
    # Input stays NCHW: zero-pad channels to cin_p, H by (1, H_tot-H-1), W by
    # (1,1); flatten spatial dims; bf16 for the MXU.
    x_pad = jnp.pad(x_nchw,
                    ((0, 0), (0, cin_p - Cin), (1, H_tot - H - 1), (1, 1)))
    x_flat = x_pad.reshape(B, cin_p, flat).astype(jnp.bfloat16)

    # Fold eval-mode BN into the 3x3 weights (scale) + a per-channel shift.
    scale_v = params["gamma"] / jnp.sqrt(params["rvar"] + eps)
    shift_v = params["beta"] - params["rmean"] * scale_v
    shift = shift_v.reshape(cout1, 1).astype(jnp.float32)

    # (Cout1,Cin,3,3) -> (Cout1,3,3,Cin) -> pad Cin -> (Cout1, 9*cin_p); column
    # k = (dy*3+dx)*cin_p + c matches the im2col row order in the kernel.
    w1 = jnp.transpose(params["w1"], (0, 2, 3, 1))
    w1 = jnp.pad(w1, ((0, 0), (0, 0), (0, 0), (0, cin_p - Cin)))
    w1 = (w1.reshape(cout1, K) * scale_v[:, None]).astype(jnp.bfloat16)

    # 1x1 conv: (Cout2, Cout1, 1, 1) -> (Cout2, Cout1)
    w2 = params["w2"][:, :, 0, 0].astype(jnp.bfloat16)
    b2 = params["b2"].reshape(cout2, 1).astype(jnp.float32)

    # --- VMEM budget (derived from the per-step footprint) ----------------------
    x_block = bt * cin_p * flat * 2
    w_blocks = cout1 * K * 2 + cout2 * cout1 * 2 + (cout1 + cout2) * 4
    col_scratch = K * n_lanes * 2
    out_block = cout2 * n_lanes * 4
    footprint = 2 * x_block + 2 * w_blocks + col_scratch + 2 * out_block
    vmem_limit = int(min(96 * 1024 * 1024,
                         max(16 * 1024 * 1024, 2 * footprint)))

    kernel = _make_scale_prediction_kernel(bt, cin_p, cout1, cout2, Wp, hwp_pad)

    # TODO(synk): for realistic channel counts (Cin~512, Cout1~1024), skip the
    # im2col scratch (per-tap K=Cin matmuls into an f32 accumulator), tile the
    # grid over Cout1 ("arbitrary", last), and single-buffer the constant
    # weight operands (pipeline_mode=pl.Buffered(1)) for the v7x VMEM budget.
    out_flat = pl.pallas_call(
        kernel,
        out_shape=jax.ShapeDtypeStruct((B // bt, cout2, n_lanes), jnp.float32),
        grid_spec=pltpu.PrefetchScalarGridSpec(
            num_scalar_prefetch=0,
            grid=(B // bt,),
            in_specs=[
                pl.BlockSpec((bt, cin_p, flat), lambda g: (g, 0, 0)),
                pl.BlockSpec((cout1, K), lambda g: (0, 0)),
                pl.BlockSpec((cout1, 1), lambda g: (0, 0)),
                pl.BlockSpec((cout2, cout1), lambda g: (0, 0)),
                pl.BlockSpec((cout2, 1), lambda g: (0, 0)),
            ],
            out_specs=pl.BlockSpec((1, cout2, n_lanes), lambda g: (g, 0, 0)),
            scratch_shapes=[pltpu.VMEM((K, n_lanes), jnp.bfloat16)],
        ),
        compiler_params=pltpu.CompilerParams(
            dimension_semantics=("parallel",),
            vmem_limit_bytes=vmem_limit,
        ),
    )(x_flat, w1, shift, w2, b2)

    # Un-pack: split per-image lane groups, drop lane padding + width padding,
    # then apply the PyTorch reshape(b, 3, 5+nc, h, w).permute(0, 1, 3, 4, 2).
    out_img = out_flat.reshape(B // bt, cout2, bt, hwp_pad)
    out_img = jnp.transpose(out_img, (0, 2, 1, 3)).reshape(B, cout2, hwp_pad)
    out_nchw = out_img[:, :, :hwp].reshape(B, cout2, H, Wp)[:, :, :, :W]
    out = out_nchw.reshape(B, 3, 5 + num_classes, H, W)
    return jnp.transpose(out, (0, 1, 3, 4, 2))   # (B, 3, H, W, 5+nc)


def init_params(key, in_channels, num_classes):
    cout1 = 2 * in_channels
    cout2 = 3 * (5 + num_classes)
    k1, k2, k3, k4, k5, k6, k7 = jax.random.split(key, 7)
    # PyTorch conv weight layout (Cout, Cin, kh, kw)
    w1_pt = jax.random.normal(k1, (cout1, in_channels, 3, 3), jnp.float32) * 0.1
    gamma = jax.random.normal(k2, (cout1,), jnp.float32) * 0.1 + 1.0
    beta = jax.random.normal(k3, (cout1,), jnp.float32) * 0.1
    rmean = jax.random.normal(k4, (cout1,), jnp.float32) * 0.1
    rvar = jax.random.uniform(k5, (cout1,), jnp.float32, 0.5, 1.5)
    w2_pt = jax.random.normal(k6, (cout2, cout1, 1, 1), jnp.float32) * 0.1
    b2 = jax.random.normal(k7, (cout2,), jnp.float32) * 0.1
    return dict(w1=w1_pt, gamma=gamma, beta=beta, rmean=rmean, rvar=rvar,
                w2=w2_pt, b2=b2)


def _reference_scale_prediction(x, params, num_classes, eps=1e-5):
    # Pure-JAX (XLA) f32 reference of the PyTorch forward (eval-mode BN).
    conv1 = jax.lax.conv_general_dilated(
        x, params["w1"], window_strides=(1, 1), padding="SAME",
        dimension_numbers=("NCHW", "OIHW", "NCHW"))
    scale = params["gamma"] / jnp.sqrt(params["rvar"] + eps)
    shift = params["beta"] - params["rmean"] * scale
    y = conv1 * scale[None, :, None, None] + shift[None, :, None, None]
    y = jnp.where(y > 0, y, 0.1 * y)
    conv2 = jax.lax.conv_general_dilated(
        y, params["w2"], window_strides=(1, 1), padding="VALID",
        dimension_numbers=("NCHW", "OIHW", "NCHW"))
    conv2 = conv2 + params["b2"][None, :, None, None]
    B, _, H, W = x.shape
    out = conv2.reshape(B, 3, 5 + num_classes, H, W)
    return jnp.transpose(out, (0, 1, 3, 4, 2))


if __name__ == "__main__":
    key = jax.random.PRNGKey(0)
    kx, kp = jax.random.split(key)

    B, Cin, H, W = 2, 4, 16, 16
    num_classes = 3

    x = jax.random.normal(kx, (B, Cin, H, W), jnp.float32)
    params = init_params(kp, Cin, num_classes)

    out = scale_prediction(x, params, num_classes)
    out = jax.block_until_ready(out)
    assert out.shape == (B, 3, H, W, 5 + num_classes), out.shape

    # Loose tolerance check vs f32 XLA reference (kernel matmuls run in bf16,
    # with BN scale folded into bf16 w1).
    ref = _reference_scale_prediction(x, params, num_classes)
    rel_err = jnp.linalg.norm(out - ref) / jnp.maximum(jnp.linalg.norm(ref), 1e-6)
    assert float(rel_err) < 5e-2, float(rel_err)

    print("KERNEL_OK")
</pallas_src>

<mosaic_0001>
module attributes {stable_mosaic.version = 11 : i64} {
  func.func @kernel(%arg0: i32, %arg1: memref<1x8x432xbf16, #tpu.memory_space<vmem>>, %arg2: memref<8x72xbf16, #tpu.memory_space<vmem>>, %arg3: memref<8x1xf32, #tpu.memory_space<vmem>>, %arg4: memref<24x8xbf16, #tpu.memory_space<vmem>>, %arg5: memref<24x1xf32, #tpu.memory_space<vmem>>, %arg6: memref<1x24x384xf32, #tpu.memory_space<vmem>>, %arg7: memref<72x384xbf16, #tpu.memory_space<vmem>>) attributes {dimension_semantics = [#tpu.dimension_semantics<parallel>], iteration_bounds = array<i64: 2>, scalar_prefetch = 0 : i64, scratch_operands = 1 : i64, tpu.core_type = #tpu.core_type<tc>, window_params = [{transform_indices = @transform_0, window_bounds = array<i64: 1, 8, 432>}, {pipeline_mode = #tpu.pipeline_mode<synchronous>, transform_indices = @transform_1, window_bounds = array<i64: 8, 72>}, {pipeline_mode = #tpu.pipeline_mode<synchronous>, transform_indices = @transform_2, window_bounds = array<i64: 8, 1>}, {pipeline_mode = #tpu.pipeline_mode<synchronous>, transform_indices = @transform_3, window_bounds = array<i64: 24, 8>}, {pipeline_mode = #tpu.pipeline_mode<synchronous>, transform_indices = @transform_4, window_bounds = array<i64: 24, 1>}, {transform_indices = @transform_5, window_bounds = array<i64: 1, 24, 384>}]} {
    %c0 = arith.constant 0 : index
    %c0_0 = arith.constant 0 : index
    %c0_1 = arith.constant 0 : index
    %0 = vector.load %arg1[%c0, %c0_0, %c0_1] : memref<1x8x432xbf16, #tpu.memory_space<vmem>>, vector<1x8x384xbf16>
    %1 = vector.shape_cast %0 : vector<1x8x384xbf16> to vector<8x384xbf16>
    %c0_2 = arith.constant 0 : index
    %c0_3 = arith.constant 0 : index
    %2 = vector.load %arg7[%c0_2, %c0_3] : memref<72x384xbf16, #tpu.memory_space<vmem>>, vector<8x384xbf16>
    tpu.vector_store %arg7[%c0_2, %c0_3], %1 {strides = array<i32>} : memref<72x384xbf16, #tpu.memory_space<vmem>>, vector<8x384xbf16>,
    %c0_4 = arith.constant 0 : index
    %c0_5 = arith.constant 0 : index
    %c1 = arith.constant 1 : index
    %3 = vector.load %arg1[%c0_4, %c0_5, %c1] : memref<1x8x432xbf16, #tpu.memory_space<vmem>>, vector<1x8x384xbf16>
    %4 = vector.shape_cast %3 : vector<1x8x384xbf16> to vector<8x384xbf16>
    %c8 = arith.constant 8 : index
    %c0_6 = arith.constant 0 : index
    %5 = vector.load %arg7[%c8, %c0_6] : memref<72x384xbf16, #tpu.memory_space<vmem>>, vector<8x384xbf16>
    tpu.vector_store %arg7[%c8, %c0_6], %4 {strides = array<i32>} : memref<72x384xbf16, #tpu.memory_space<vmem>>, vector<8x384xbf16>,
    %c0_7 = arith.constant 0 : index
    %c0_8 = arith.constant 0 : index
    %c2 = arith.constant 2 : index
    %6 = vector.load %arg1[%c0_7, %c0_8, %c2] : memref<1x8x432xbf16, #tpu.memory_space<vmem>>, vector<1x8x384xbf16>
    %7 = vector.shape_cast %6 : vector<1x8x384xbf16> to vector<8x384xbf16>
    %c16 = arith.constant 16 : index
    %c0_9 = arith.constant 0 : index
    %8 = vector.load %arg7[%c16, %c0_9] : memref<72x384xbf16, #tpu.memory_space<vmem>>, vector<8x384xbf16>
    tpu.vector_store %arg7[%c16, %c0_9], %7 {strides = array<i32>} : memref<72x384xbf16, #tpu.memory_space<vmem>>, vector<8x384xbf16>,
    %c0_10 = arith.constant 0 : index
    %c0_11 = arith.constant 0 : index
    %c18 = arith.constant 18 : index
    %9 = vector.load %arg1[%c0_10, %c0_11, %c18] : memref<1x8x432xbf16, #tpu.memory_space<vmem>>, vector<1x8x384xbf16>
    %10 = vector.shape_cast %9 : vector<1x8x384xbf16> to vector<8x384xbf16>
    %c24 = arith.constant 24 : index
    %c0_12 = arith.constant 0 : index
    %11 = vector.load %arg7[%c24, %c0_12] : memref<72x384xbf16, #tpu.memory_space<vmem>>, vector<8x384xbf16>
    tpu.vector_store %arg7[%c24, %c0_12], %10 {strides = array<i32>} : memref<72x384xbf16, #tpu.memory_space<vmem>>, vector<8x384xbf16>,
    %c0_13 = arith.constant 0 : index
    %c0_14 = arith.constant 0 : index
    %c19 = arith.constant 19 : index
    %12 = vector.load %arg1[%c0_13, %c0_14, %c19] : memref<1x8x432xbf16, #tpu.memory_space<vmem>>, vector<1x8x384xbf16>
    %13 = vector.shape_cast %12 : vector<1x8x384xbf16> to vector<8x384xbf16>
    %c32 = arith.constant 32 : index
    %c0_15 = arith.constant 0 : index
    %14 = vector.load %arg7[%c32, %c0_15] : memref<72x384xbf16, #tpu.memory_space<vmem>>, vector<8x384xbf16>
    tpu.vector_store %arg7[%c32, %c0_15], %13 {strides = array<i32>} : memref<72x384xbf16, #tpu.memory_space<vmem>>, vector<8x384xbf16>,
    %c0_16 = arith.constant 0 : index
    %c0_17 = arith.constant 0 : index
    %c20 = arith.constant 20 : index
    %15 = vector.load %arg1[%c0_16, %c0_17, %c20] : memref<1x8x432xbf16, #tpu.memory_space<vmem>>, vector<1x8x384xbf16>
    %16 = vector.shape_cast %15 : vector<1x8x384xbf16> to vector<8x384xbf16>
    %c40 = arith.constant 40 : index
    %c0_18 = arith.constant 0 : index
    %17 = vector.load %arg7[%c40, %c0_18] : memref<72x384xbf16, #tpu.memory_space<vmem>>, vector<8x384xbf16>
    tpu.vector_store %arg7[%c40, %c0_18], %16 {strides = array<i32>} : memref<72x384xbf16, #tpu.memory_space<vmem>>, vector<8x384xbf16>,
    %c0_19 = arith.constant 0 : index
    %c0_20 = arith.constant 0 : index
    %c36 = arith.constant 36 : index
    %18 = vector.load %arg1[%c0_19, %c0_20, %c36] : memref<1x8x432xbf16, #tpu.memory_space<vmem>>, vector<1x8x384xbf16>
    %19 = vector.shape_cast %18 : vector<1x8x384xbf16> to vector<8x384xbf16>
    %c48 = arith.constant 48 : index
    %c0_21 = arith.constant 0 : index
    %20 = vector.load %arg7[%c48, %c0_21] : memref<72x384xbf16, #tpu.memory_space<vmem>>, vector<8x384xbf16>
    tpu.vector_store %arg7[%c48, %c0_21], %19 {strides = array<i32>} : memref<72x384xbf16, #tpu.memory_space<vmem>>, vector<8x384xbf16>,
    %c0_22 = arith.constant 0 : index
    %c0_23 = arith.constant 0 : index
    %c37 = arith.constant 37 : index
    %21 = vector.load %arg1[%c0_22, %c0_23, %c37] : memref<1x8x432xbf16, #tpu.memory_space<vmem>>, vector<1x8x384xbf16>
    %22 = vector.shape_cast %21 : vector<1x8x384xbf16> to vector<8x384xbf16>
    %c56 = arith.constant 56 : index
    %c0_24 = arith.constant 0 : index
    %23 = vector.load %arg7[%c56, %c0_24] : memref<72x384xbf16, #tpu.memory_space<vmem>>, vector<8x384xbf16>
    tpu.vector_store %arg7[%c56, %c0_24], %22 {strides = array<i32>} : memref<72x384xbf16, #tpu.memory_space<vmem>>, vector<8x384xbf16>,
    %c0_25 = arith.constant 0 : index
    %c0_26 = arith.constant 0 : index
    %c38 = arith.constant 38 : index
    %24 = vector.load %arg1[%c0_25, %c0_26, %c38] : memref<1x8x432xbf16, #tpu.memory_space<vmem>>, vector<1x8x384xbf16>
    %25 = vector.shape_cast %24 : vector<1x8x384xbf16> to vector<8x384xbf16>
    %c64 = arith.constant 64 : index
    %c0_27 = arith.constant 0 : index
    %26 = vector.load %arg7[%c64, %c0_27] : memref<72x384xbf16, #tpu.memory_space<vmem>>, vector<8x384xbf16>
    tpu.vector_store %arg7[%c64, %c0_27], %25 {strides = array<i32>} : memref<72x384xbf16, #tpu.memory_space<vmem>>, vector<8x384xbf16>,
    %c0_28 = arith.constant 0 : index
    %c0_29 = arith.constant 0 : index
    %27 = vector.load %arg2[%c0_28, %c0_29] : memref<8x72xbf16, #tpu.memory_space<vmem>>, vector<8x72xbf16>
    %c0_30 = arith.constant 0 : index
    %c0_31 = arith.constant 0 : index
    %28 = vector.load %arg7[%c0_30, %c0_31] : memref<72x384xbf16, #tpu.memory_space<vmem>>, vector<72x384xbf16>
    %cst = arith.constant dense<0.000000e+00> : vector<8x384xf32>
    %29 = tpu.matmul %27, %28, %cst {dimension_numbers = #tpu.dot_dimension_numbers<[1], [0], [0], [1], [0, 0, 1, 1], [], []>} : vector<8x72xbf16>, vector<72x384xbf16>, vector<8x384xf32> -> vector<8x384xf32>
    %c0_32 = arith.constant 0 : index
    %c0_33 = arith.constant 0 : index
    %30 = vector.load %arg3[%c0_32, %c0_33] : memref<8x1xf32, #tpu.memory_space<vmem>>, vector<8x1xf32>
    %31 = vector.broadcast %30 : vector<8x1xf32> to vector<8x384xf32>
    %32 = arith.addf %29, %31 : vector<8x384xf32>
    %cst_34 = arith.constant 0.000000e+00 : f32
    %33 = vector.broadcast %cst_34 : f32 to vector<8x384xf32>
    %34 = arith.cmpf ogt, %32, %33 : vector<8x384xf32>
    %cst_35 = arith.constant 1.000000e-01 : f32
    %35 = vector.broadcast %cst_35 : f32 to vector<8x384xf32>
    %36 = arith.mulf %35, %32 : vector<8x384xf32>
    %37 = arith.select %34, %32, %36 : vector<8x384xi1>, vector<8x384xf32>
    %c0_36 = arith.constant 0 : index
    %c0_37 = arith.constant 0 : index
    %38 = vector.load %arg4[%c0_36, %c0_37] : memref<24x8xbf16, #tpu.memory_space<vmem>>, vector<24x8xbf16>
    %39 = arith.truncf %37 : vector<8x384xf32> to vector<8x384xbf16>
    %cst_38 = arith.constant dense<0.000000e+00> : vector<24x384xf32>
    %40 = tpu.matmul %38, %39, %cst_38 {dimension_numbers = #tpu.dot_dimension_numbers<[1], [0], [0], [1], [0, 0, 1, 1], [], []>} : vector<24x8xbf16>, vector<8x384xbf16>, vector<24x384xf32> -> vector<24x384xf32>
    %c0_39 = arith.constant 0 : index
    %c0_40 = arith.constant 0 : index
    %41 = vector.load %arg5[%c0_39, %c0_40] : memref<24x1xf32, #tpu.memory_space<vmem>>, vector<24x1xf32>
    %42 = vector.broadcast %41 : vector<24x1xf32> to vector<24x384xf32>
    %43 = arith.addf %40, %42 : vector<24x384xf32>
    %c0_41 = arith.constant 0 : index
    %c0_42 = arith.constant 0 : index
    %c0_43 = arith.constant 0 : index
    %44 = vector.load %arg6[%c0_41, %c0_42, %c0_43] : memref<1x24x384xf32, #tpu.memory_space<vmem>>, vector<1x24x384xf32>
    %45 = vector.shape_cast %44 : vector<1x24x384xf32> to vector<24x384xf32>
    %46 = vector.shape_cast %43 : vector<24x384xf32> to vector<1x24x384xf32>
    tpu.vector_store %arg6[%c0_41, %c0_42, %c0_43], %46 {strides = array<i32>} : memref<1x24x384xf32, #tpu.memory_space<vmem>>, vector<1x24x384xf32>,
    return
  }
  func.func @transform_0(%arg0: i32) -> (i32, i32, i32) {
    %c0_i32 = arith.constant 0 : i32
    %c0_i32_0 = arith.constant 0 : i32
    %c0_i32_1 = arith.constant 0 : i32
    return %arg0, %c0_i32, %c0_i32_0 : i32, i32, i32
  }
  func.func @transform_1(%arg0: i32) -> (i32, i32) {
    %c0_i32 = arith.constant 0 : i32
    %c0_i32_0 = arith.constant 0 : i32
    %c0_i32_1 = arith.constant 0 : i32
    return %c0_i32, %c0_i32_0 : i32, i32
  }
  func.func @transform_2(%arg0: i32) -> (i32, i32) {
    %c0_i32 = arith.constant 0 : i32
    %c0_i32_0 = arith.constant 0 : i32
    %c0_i32_1 = arith.constant 0 : i32
    return %c0_i32, %c0_i32_0 : i32, i32
  }
  func.func @transform_3(%arg0: i32) -> (i32, i32) {
    %c0_i32 = arith.constant 0 : i32
    %c0_i32_0 = arith.constant 0 : i32
    %c0_i32_1 = arith.constant 0 : i32
    return %c0_i32, %c0_i32_0 : i32, i32
  }
  func.func @transform_4(%arg0: i32) -> (i32, i32) {
    %c0_i32 = arith.constant 0 : i32
    %c0_i32_0 = arith.constant 0 : i32
    %c0_i32_1 = arith.constant 0 : i32
    return %c0_i32, %c0_i32_0 : i32, i32
  }
  func.func @transform_5(%arg0: i32) -> (i32, i32, i32) {
    %c0_i32 = arith.constant 0 : i32
    %c0_i32_0 = arith.constant 0 : i32
    %c0_i32_1 = arith.constant 0 : i32
    return %arg0, %c0_i32, %c0_i32_0 : i32, i32, i32
  }
}

</mosaic_0001>

<bundles_post_ra>
// kernel: tpu_custom_call.1
= control target key start
LH: loop header
LB: loop body
LE: loop exit
PB: predicated region body
PF: predicated region fallthrough
CT: control target
= control target key end

     0   :  { %10 = vsyncpa [#allocation4], 0  ;;  %s1130_s0 = inlined_call_operand.vmem [shape: bf16[2,8,432], index: 0, kind: input, shape index: {}]   ;;  %s1131_s1 = inlined_call_operand.vmem [shape: bf16[8,72], index: 1, kind: input, shape index: {}]   ;;  %s1132_s2 = inlined_call_operand.vmem [shape: f32[8,1], index: 2, kind: input, shape index: {}]   ;;  %s1133_s3 = inlined_call_operand.vmem [shape: bf16[24,8], index: 3, kind: input, shape index: {}]   ;;  %s1134_s4 = inlined_call_operand.vmem [shape: f32[24,1], index: 4, kind: input, shape index: {}]   ;;  %s1135_s5 = inlined_call_operand.hbm [shape: f32[2,24,384], index: 5, kind: output, shape index: {}]  }
   0x1   :  { %12 = vsyncpa [#allocation4 + $0x1], 0  ;;  %s967_s18 = smov 0   ;;  %s969_s19 = smov 0  }
   0x2   :  { %s971_s20 = smov 0   ;;  %s973_s21 = smov 0  }
   0x3 LB: > { %s988_s22 = sadd.s32 4294967295, %s924_s21   ;;  %s721_s23 = sadd.s32 4294967294, %s924_s21   ;;  %s924_s21 = sphi %s973_s21, %s1141_s21   ;;  %s920_s20 = sphi %s971_s20, %s1140_s20   ;;  %s916_s19 = sphi %s969_s19, %s1139_s19   ;;  %s912_s18 = sphi %s967_s18, %s1138_s18  }
   0x4   : > { %s992_s24 = sadd.s32 1, %s924_s21   ;;  %s135_s25 = sadd.s32 1, %s920_s20 }
   0x5   : > { %s132_s26 = ssub.s32 %s924_s21, %s992_s24  ;;  %p145_p0 = scmp.ne.s32.totalorder %s920_s20, %s916_s19 }
   0x6   : > { %p133_p1 = scmp.eq.s32.totalorder %s132_s26, 0  ;;  %p146_p2 = scmp.eq.s32.totalorder %s988_s22, 1 }
   0x7   : > { %p151_p3 = scmp.ne.s32.totalorder %s916_s19, %s912_s18  ;;  %p152_p4 = scmp.eq.s32.totalorder %s721_s23, 1 }
   0x8   : > { %s1003_s27 = scalar_select %p133_p1, %s920_s20, %s135_s25  }
   0x9   : > { %p1005_p5 = por %p146_p2, %p145_p0  ;;  %p1009_p6 = por %p152_p4, %p151_p3 }
   0xa   : > { %p724_p7 = scmp.ge.s32.totalorder %s924_s21, 1  ;;  %p190_p8 = scmp.lt.s32.totalorder %s924_s21, 3 }
   0xc   : > { %p191_p9 = pnand %p724_p7, %p190_p8 }
   0xd   : > { %p218_p10 = scmp.lt.s32.totalorder (!%p191_p9), %s988_s22, 1  ;;  %s926_s10 = smov (!%p191_p9), 90  }
   0xe   : > { %194 = sbr.rel (%p191_p9) target bundleno = 505 (0x1f9), region = 40  ;;  %s927_s11 = smov (!%p191_p9), 92  }
   0xf   : > { %s928_s12 = smov (!%p191_p9), 91   ;;  %s929_s13 = smov (!%p191_p9), 109  }
  0x10   : > { %s930_s14 = smov (!%p191_p9), 108   ;;  %s931_s15 = smov (!%p191_p9), 126  }
  0x11   : > { %s932_s16 = smov (!%p191_p9), 110   ;;  %s933_s17 = smov (!%p191_p9), 127  }
  0x12   : > { %s808_s25 = smul.u32 (!%p191_p9), 72, %s988_s22 }
  0x13   : > { %s219_s30 = scalar_select %p218_p10, %s988_s22, 1  ;;  %vm238_vm0 = vcmask 1043456   ;;  %vm348_vm1 = vcmask 744448   ;;  %vm258_vm2 = vcmask 1031168   ;;  %vm366_vm3 = vcmask 736256   ;;  %v392_v59 = vld [vmem:[%s1132_s2] sm:$0xff] }
  0x14   : > { %vm330_vm4 = vcmask 752640   ;;  %vm294_vm5 = vcmask 891904   ;;  %vm312_vm6 = vcmask 883712   ;;  %v934_v63 = vmov 0  }
  0x15   : > { %s791_s6 = sshll.u32 %s219_s30, 4  ;;  %859 = vset.pattern.permute.xlu1 %v934_v63  ;;  %861 = vset.pattern.permute.xlu0 %v934_v63  ;;  %vm276_vm7 = vcmask 900096   ;;  %vm240_vm8 = vcmask 1039360   ;;  %vm470_vm9 = vcmask 588800   ;;  %vm564_vm13 = vcmask 64512  }
  0x16   : > { %s1020_s9 = scalar_lea.vmem %s1130_s0, %s791_s6  ;;  %860 = vset.pattern.permute.xlu2 %v934_v63  ;;  %s655_s6 = scalar_lea.hbm %s1135_s5, %s808_s25 }
  0x17   : > { %v355_v0 = vld [vmem:[%s1020_s9] sm:$0xff]  ;;  %v356_v1 = vld [vmem:[%s1020_s9 + $0x8] sm:$0xff]  ;;  %s658_s8 = sshll.u32 %s655_s6, 4  ;;  %s659_s8 = int_to_ptr.hbm [resolvable:$true] %s658_s8 }
  0x18   : > { %359 = vrot.lane.b32.xlu0 %v355_v0, %s926_s10  ;;  %323 = vrot.lane.b32.xlu1 %v355_v0, %s927_s11  ;;  %226 = vst [vmem:[#allocation2] sm:$0xff] %v355_v0  ;;  %v225_v29 = vld [vmem:[%s1020_s9 + $0x8] sm:$0xf] }
  0x19   : > { %341 = vrot.lane.b32.xlu2 %v355_v0, %s928_s12  ;;  %227 = vst [vmem:[#allocation2 + $0x8] sm:$0xf] %v225_v29 }
  0x20   : > { %361 = vrot.lane.b32.xlu0 %v356_v1, %s926_s10  ;;  %325 = vrot.lane.b32.xlu1 %v356_v1, %s927_s11  ;;  %s876_s10 = sshra.s32 %s659_s8, 4  ;;  %s877_s10 = int_to_ptr.hbm [resolvable:$true] %s876_s10 }
  0x21   : > { %343 = vrot.lane.b32.xlu2 %v356_v1, %s928_s12  ;;  %s878_s11 = scalar_lea.hbm %s877_s10, 72  ;;  %p883_p0 = scmp.lt.s32.totalorder %s877_s10, %s1135_s5 }
  0x22   : > { %p879_p11 = scmp.ne.s32.totalorder %s877_s10, %s878_s11 }
  0x24   : > { %p880_p12 = pnand %p879_p11, %p1005_p5 }
  0x26   : > { %p881_p13 = pneg %p880_p12 }
  0x28   : > { %289 = vrot.lane.b32.xlu1 %v356_v1, %s929_s13  ;;  %287 = vrot.lane.b32.xlu0 %v355_v0, %s929_s13  ;;  %s882_s13 = scalar_lea.hbm %s1135_s5, 144 }
  0x29   : > { %305 = vrot.lane.b32.xlu2 %v355_v0, %s930_s14  ;;  %p884_p1 = scmp.lt.s32.totalorder %s882_s13, %s878_s11 }
  0x2b   : > { %p885_p2 = por %p884_p1, %p883_p0 }
  0x2d   : > { %p886_p3 = pnand %p885_p2, %p881_p13 }
  0x30   : > { %307 = vrot.lane.b32.xlu0 %v356_v1, %s930_s14  ;;  %251 = vrot.lane.b32.xlu1 %v355_v0, %s931_s15 }
  0x31   : > { %253 = vrot.lane.b32.xlu2 %v356_v1, %s931_s15 }
  0x38   : > { %269 = vrot.lane.b32.xlu0 %v355_v0, %s932_s16  ;;  %271 = vrot.lane.b32.xlu1 %v356_v1, %s932_s16  ;;  %s215_s16 = sand.u32 1, %s916_s19  }
  0x39   : > { %232 = vrot.lane.b32.xlu2 %v355_v0, %s933_s17  ;;  %s644_s9 = scalar_lea.sflag [#allocation4], %s215_s16 }
  0x40   : > { %234 = vrot.lane.b32.xlu0 %v356_v1, %s933_s17  ;;  %395 = vperm.xlu1 %859, %v392_v59   ;;  %s807_s17 = smul.u32 72, %s215_s16 }
  0x42   : > { %s1085_s23 = scalar_lea.vmem [#allocation3], %s807_s17 }
  0x43   : > { %s656_s7 = sshll.u32 %s1085_s23, 4  ;;  %s657_s7 = int_to_ptr.vmem [resolvable:$true] %s656_s7 }
  0x73   : > { %v342_v2 = vpop.permute.xlu2 %341 }
  0x74   : > { %v345_v3 = vrot.slane %v342_v2, 4 }
  0x7b   : > { %v344_v4 = vpop.permute.xlu2 %343 }
  0x7c   : > { %v346_v5 = vrot.slane %v344_v4, 4 }
  0x7e   : > { %v347_v6 = vsel %vm238_vm0, %v345_v3, %v346_v5  ;;  %v350_v7 = vsel %vm348_vm1, %v344_v4, %v346_v5 }
  0x7f   : > { %v349_v8 = vsel %vm348_vm1, %v342_v2, %v347_v6  ;;  %354 = vst [vmem:[#allocation2 + $0x5c] sm:$0xf] %v350_v7  ;;  %v540_v6 = vld [vmem:[%s1134_s4 + $0x10] sm:$0xff] }
  0x80   : > { %353 = vst [vmem:[#allocation2 + $0x54] sm:$0xff] %v349_v8  ;;  %553 = vperm.xlu1 %859, %v540_v6   ;;  %v538_v6 = vld [vmem:[%s1134_s4] sm:$0xff] }
  0x81   : > { %543 = vperm.xlu2 %860, %v538_v6  }
  0x83   : > { %v1025_v9 = vpop.permute.xlu2 %305 }
  0x84   : > { %v309_v50 = vrot.slane %v1025_v9, 4 }
  0x86   : > { %v803_v52 = vld [vmem:[#allocation2 + $0x58] sm:$0xf0] }
  0x87   : > { %v802_v43 = vld [vmem:[#allocation2 + $0x50] sm:$0xf0]  ;;  %v767_v44 = vld [vmem:[#allocation2 + $0x54] sm:$0xf0] }
  0x8a   : > { %v360_v10 = vpop.permute.xlu0 %359  ;;  %v324_v11 = vpop.permute.xlu1 %323 }
  0x8b   : > { %v1027_v12 = vpop.permute.xlu2 %253  ;;  %v363_v17 = vrot.slane %v360_v10, 4  ;;  %v327_v18 = vrot.slane %v324_v11, 4 }
  0x8c   : > { %v256_v13 = vrot.slane %v1027_v12, 4 }
  0x8e   : > { %v260_v14 = vsel %vm258_vm2, %v1027_v12, %v256_v13 }
  0x8f   : > { %264 = vst [vmem:[#allocation2 + $0x20] sm:$0xf] %v260_v14 }
  0x92   : > { %v362_v15 = vpop.permute.xlu0 %361  ;;  %v326_v16 = vpop.permute.xlu1 %325 }
  0x93   : > { %v364_v19 = vrot.slane %v362_v15, 4  ;;  %v328_v20 = vrot.slane %v326_v16, 4 }
  0x95   : > { %v365_v21 = vsel %vm238_vm0, %v363_v17, %v364_v19  ;;  %v368_v22 = vsel %vm366_vm3, %v362_v15, %v364_v19  ;;  %v329_v23 = vsel %vm238_vm0, %v327_v18, %v328_v20  ;;  %v332_v26 = vsel %vm330_vm4, %v326_v16, %v328_v20  ;;  %v233_v17 = vpop.permute.xlu2 %232 }
  0x96   : > { %v367_v24 = vsel %vm366_vm3, %v360_v10, %v365_v21  ;;  %372 = vst [vmem:[#allocation2 + $0x68] sm:$0xf] %v368_v22  ;;  %v331_v25 = vsel %vm330_vm4, %v324_v11, %v329_v23  ;;  %v236_v20 = vrot.slane %v233_v17, 4  ;;  %v749_v23 = vld [vmem:[#allocation2 + $0x20] sm:$0xf] }
  0x97   : > { %v440_v27 = vunpack.c.l.b16 %v367_v24  ;;  %v441_v28 = vunpack.c.h.b16 %v367_v24  ;;  %335 = vst [vmem:[#allocation2 + $0x48] sm:$0xff] %v331_v25 }
  0x98   : > { %336 = vst [vmem:[#allocation2 + $0x50] sm:$0xf] %v332_v26 }
  0x99   : > { %v455_v30 = vpack.c.b16 %v440_v27, %v440_v27  ;;  %v456_v31 = vpack.c.b16 %v441_v28, %v441_v28 }
  0x9a   : > { %v290_v32 = vpop.permute.xlu1 %289  ;;  %v288_v33 = vpop.permute.xlu0 %287 }
  0x9b   : > { %v292_v34 = vrot.slane %v290_v32, 4  ;;  %v291_v35 = vrot.slane %v288_v33, 4  ;;  %v476_v36 = vsel %vm238_vm0, %v455_v30, 0  ;;  %v479_v37 = vsel %vm238_vm0, %v456_v31, 0 }
  0x9c   : > { %487 = vmatpush.bf16.msra.mxu0 %v476_v36  ;;  %500 = vmatpush.bf16.msra.mxu1 %v479_v37  ;;  %v729_v36 = vld [vmem:[#allocation2] sm:$0xf]  ;;  %v792_v37 = vld [vmem:[#allocation2 + $0x4] sm:$0xf] }
  0x9d   : > { %v296_v38 = vsel %vm294_vm5, %v290_v32, %v292_v34  ;;  %v293_v39 = vsel %vm238_vm0, %v291_v35, %v292_v34  ;;  %v391_v40 = vld [vmem:[#allocation2 + $0x68] sm:$0xf] }
  0x9e   : > { %300 = vst [vmem:[#allocation2 + $0x38] sm:$0xf] %v296_v38  ;;  %v295_v41 = vsel %vm294_vm5, %v288_v33, %v293_v39  ;;  %v442_v42 = vunpack.c.l.b16 %v391_v40  ;;  %v765_v45 = vld [vmem:[#allocation2 + $0x48] sm:$0xf]  ;;  %v801_v46 = vld [vmem:[#allocation2 + $0x4c] sm:$0xf] }
  0x9f   : > { %299 = vst [vmem:[#allocation2 + $0x30] sm:$0xff] %v295_v41  ;;  %v766_v48 = vor.u32 %v802_v43, %v765_v45  ;;  %v770_v49 = vor.u32 %v801_v46, %v767_v44  ;;  %v773_v51 = vld [vmem:[#allocation2 + $0x50] sm:$0xf]  ;;  %v737_v35 = vld [vmem:[#allocation2 + $0x8] sm:$0xf] }
  0xa0   : > { %v457_v47 = vpack.c.b16 %v442_v42, %v442_v42  ;;  %v774_v58 = vor.u32 %v803_v52, %v773_v51  ;;  %v373_v44 = vld [vmem:[%s1131_s1] sm:$0xf]  ;;  %v539_v45 = vld [vmem:[%s1134_s4 + $0x8] sm:$0xff] }
  0xa1   : > { %488 = vmatpush.bf16.msra.mxu0 %v766_v48  ;;  %501 = vmatpush.bf16.msra.mxu1 %v770_v49  ;;  %v534_v51 = vld [vmem:[%s1133_s3 + $0x8] sm:$0xf] }
  0xa2   : > { %v308_v53 = vpop.permute.xlu0 %307  ;;  %v252_v54 = vpop.permute.xlu1 %251  ;;  %v482_v55 = vsel %vm238_vm0, %v457_v47, 0  ;;  %548 = vperm.xlu0 %861, %v539_v45  }
  0xa3   : > { %v310_v56 = vrot.slane %v308_v53, 4  ;;  %v255_v57 = vrot.slane %v252_v54, 4  ;;  %513 = vmatpush.bf16.msra.mxu2 %v482_v55 }
  0xa5   : > { %v311_v60 = vsel %vm238_vm0, %v309_v50, %v310_v56  ;;  %v314_v61 = vsel %vm312_vm6, %v308_v53, %v310_v56  ;;  %v257_v62 = vsel %vm238_vm0, %v255_v57, %v256_v13  ;;  %v761_v7 = vld [vmem:[#allocation2 + $0x38] sm:$0xf]  ;;  %v561_v57 = vunpack.c.l.b16 %v534_v51 }
  0xa6   : > { %v313_v0 = vsel %vm312_vm6, %v1025_v9, %v311_v60  ;;  %318 = vst [vmem:[#allocation2 + $0x44] sm:$0xf] %v314_v61  ;;  %v259_v1 = vsel %vm258_vm2, %v252_v54, %v257_v62  ;;  %v753_v11 = vld [vmem:[#allocation2 + $0x30] sm:$0xf]  ;;  %v798_v12 = vld [vmem:[#allocation2 + $0x34] sm:$0xf] }
  0xa7   : > { %317 = vst [vmem:[#allocation2 + $0x3c] sm:$0xff] %v313_v0  ;;  %514 = vmatpush.bf16.msra.mxu2 %v774_v58 }
  0xa8   : > { %263 = vst [vmem:[#allocation2 + $0x18] sm:$0xff] %v259_v1  ;;  %v804_v1 = vld [vmem:[%s1133_s3] sm:$0xff] }
  0xaa   : > { %v270_v2 = vpop.permute.xlu0 %269  ;;  %v272_v3 = vpop.permute.xlu1 %271 }
  0xab   : > { %v273_v4 = vrot.slane %v270_v2, 4  ;;  %v274_v5 = vrot.slane %v272_v3, 4 }
  0xad   : > { %v275_v8 = vsel %vm238_vm0, %v273_v4, %v274_v5  ;;  %v278_v9 = vsel %vm276_vm7, %v272_v3, %v274_v5  ;;  %v800_v10 = vld [vmem:[#allocation2 + $0x40] sm:$0xf0]  ;;  %v563_v3 = vpack.c.b16 %v561_v57, %v561_v57 }
  0xae   : > { %v277_v13 = vsel %vm276_vm7, %v270_v2, %v275_v8  ;;  %282 = vst [vmem:[#allocation2 + $0x2c] sm:$0xf] %v278_v9  ;;  %v762_v14 = vor.u32 %v800_v10, %v761_v7  ;;  %v799_v15 = vld [vmem:[#allocation2 + $0x38] sm:$0xf0]  ;;  %v755_v16 = vld [vmem:[#allocation2 + $0x3c] sm:$0xf0] }
  0xaf   : > { %281 = vst [vmem:[#allocation2 + $0x24] sm:$0xff] %v277_v13  ;;  %v754_v18 = vor.u32 %v799_v15, %v753_v11  ;;  %v758_v19 = vor.u32 %v798_v12, %v755_v16  ;;  %v741_v27 = vld [vmem:[#allocation2 + $0x18] sm:$0xf]  ;;  %v795_v28 = vld [vmem:[#allocation2 + $0x1c] sm:$0xf] }
  0xb0   : > { %515 = vmatpush.bf16.msra.mxu2 %v762_v14 }
  0xb1   : > { %489 = vmatpush.bf16.msra.mxu0 %v754_v18  ;;  %502 = vmatpush.bf16.msra.mxu1 %v758_v19 }
  0xb2   : > { %v235_v21 = vpop.permute.xlu0 %234  ;;  %v396_v46 = vpop.permute.xlu1 %395 }
  0xb3   : > { %v237_v22 = vrot.slane %v235_v21, 4 }
  0xb5   : > { %v242_v24 = vsel %vm240_vm8, %v235_v21, %v237_v22  ;;  %v239_v25 = vsel %vm238_vm0, %v236_v20, %v237_v22  ;;  %v797_v26 = vld [vmem:[#allocation2 + $0x28] sm:$0xf0] }
  0xb6   : > { %246 = vst [vmem:[#allocation2 + $0x14] sm:$0xf] %v242_v24  ;;  %v241_v29 = vsel %vm240_vm8, %v233_v17, %v239_v25  ;;  %v750_v30 = vor.u32 %v797_v26, %v749_v23  ;;  %v796_v31 = vld [vmem:[#allocation2 + $0x20] sm:$0xf0]  ;;  %v743_v32 = vld [vmem:[#allocation2 + $0x24] sm:$0xf0] }
  0xb7   : > { %245 = vst [vmem:[#allocation2 + $0xc] sm:$0xff] %v241_v29  ;;  %v742_v33 = vor.u32 %v796_v31, %v741_v27  ;;  %v746_v34 = vor.u32 %v795_v28, %v743_v32 }
  0xb8   : > { %516 = vmatpush.bf16.msra.mxu2 %v750_v30 }
  0xb9   : > { %490 = vmatpush.bf16.msra.mxu0 %v742_v33  ;;  %503 = vmatpush.bf16.msra.mxu1 %v746_v34 }
  0xbd   : > { %v794_v38 = vld [vmem:[#allocation2 + $0x10] sm:$0xf0] }
  0xbe   : > { %v738_v39 = vor.u32 %v794_v38, %v737_v35  ;;  %v793_v40 = vld [vmem:[#allocation2 + $0x8] sm:$0xf0]  ;;  %v731_v41 = vld [vmem:[#allocation2 + $0xc] sm:$0xf0] }
  0xbf   : > { %v730_v42 = vor.u32 %v793_v40, %v729_v36  ;;  %v734_v43 = vor.u32 %v792_v37, %v731_v41 }
  0xc0   : > { %517 = vmatpush.bf16.msra.mxu2 %v738_v39 }
  0xc1   : > { %491 = vmatpush.bf16.msra.mxu0 %v730_v42  ;;  %504 = vmatpush.bf16.msra.mxu1 %v734_v43 }
  0xc3   : > { %777 = vmatmul.msk.bf16.vlgmr.msra.gmra.mxu2 %vm470_vm9, %v373_v44 }
  0xc4   : > { %775 = vmatmul.msk.bf16.vlgmr.msra.gmra.mxu0 %vm470_vm9, %v373_v44  ;;  %776 = vmatmul.msk.bf16.vlgmr.msra.gmra.mxu1 %vm470_vm9, %v373_v44 }
  0xdb   : > { %v544_v9 = vpop.permute.xlu2 %543 }
  0xf2   : > { %v554_v15 = vpop.permute.xlu1 %553 }
 0x114   : > { %v549_v19 = vpop.permute.xlu0 %548 }
 0x141   : > { %v493_v47 = vpop.f32.mrf.mxu0  ;;  %v506_v48 = vpop.f32.mrf.mxu1 }
 0x142   : > { %v494_v49 = vadd.f32 %v493_v47, %v396_v46  ;;  %v507_v50 = vadd.f32 %v506_v48, %v396_v46 }
 0x144   : > { %v526_v52 = vmul.f32 0.1, %v494_v49  ;;  %v527_v53 = vmul.f32 0.1, %v507_v50  ;;  %vm523_vm10 = vcmp.gt.f32.partialorder %v494_v49, 0.0  ;;  %vm524_vm11 = vcmp.gt.f32.partialorder %v507_v50, 0.0 }
 0x146   : > { %v519_v54 = vpop.f32.mrf.mxu2  ;;  %v529_v55 = vsel %vm523_vm10, %v494_v49, %v526_v52  ;;  %v530_v56 = vsel %vm524_vm11, %v507_v50, %v527_v53 }
 0x147   : > { %v520_v58 = vadd.f32 %v519_v54, %v396_v46  ;;  %v535_v59 = vpack.c.bf16 %v529_v55, %v529_v55  ;;  %v536_v60 = vpack.c.bf16 %v530_v56, %v530_v56 }
 0x149   : > { %v528_v61 = vmul.f32 0.1, %v520_v58  ;;  %v495_v62 = vpop.f32.mrf.mxu0  ;;  %v572_v63 = vsel %vm238_vm0, %v535_v59, 0  ;;  %v575_v0 = vsel %vm238_vm0, %v536_v60, 0  ;;  %vm525_vm12 = vcmp.gt.f32.partialorder %v520_v58, 0.0  ;;  %v508_v2 = vpop.f32.mrf.mxu1 }
 0x14a   : > { %587 = vmatpush.bf16.msra.mxu3 %v572_v63  ;;  %605 = vmatpush.bf16.msrb.mxu0 %v575_v0 }
 0x14b   : > { %805 = vmatpush.bf16.msrb.mxu2 %v575_v0  ;;  %v531_v4 = vsel %vm525_vm12, %v520_v58, %v528_v61 }
 0x14c   : > { %v537_v5 = vpack.c.bf16 %v531_v4, %v531_v4 }
 0x14d   : > { %782 = vmatmul.msk.bf16.vlgmr.msra.gmra.mxu3 %vm564_vm13, %v804_v1  ;;  %784 = vmatmul.msk.bf16.vlgmr.msrb.gmra.mxu0 %vm564_vm13, %v804_v1 }
 0x14e   : > { %785 = vmatmul.msk.bf16.vlgmr.msrb.gmra.mxu2 %vm564_vm13, %v563_v3  ;;  %v521_v7 = vpop.f32.mrf.mxu2  ;;  %v578_v8 = vsel %vm238_vm0, %v537_v5, 0 }
 0x14f   : > { %623 = vmatpush.bf16.msrb.mxu1 %v578_v8  ;;  %806 = vmatpush.bf16.msrb.mxu3 %v578_v8 }
 0x152   : > { %786 = vmatmul.msk.bf16.vlgmr.msrb.gmra.mxu1 %vm564_vm13, %v804_v1 }
 0x15d   : > { %783 = vmatmul.msk.bf16.gmra.mxu3 %vm564_vm13, %v563_v3 }
 0x16d   : > { %787 = vmatmul.msk.bf16.vlgmr.msrb.gmra.mxu3 %vm564_vm13, %v563_v3 }
 0x1ca   : > { %v607_v10 = vpop.f32.mrf.mxu0 }
 0x1cb   : > { %v608_v11 = vadd.f32 %v607_v10, %v544_v9 }
 0x1cd   : > { %635 = vst [vmem:[%s1085_s23 + $0x8] sm:$0xff] %v608_v11 }
 0x1cf   : > { %v625_v12 = vpop.f32.mrf.mxu1 }
 0x1d0   : > { %v589_v13 = vpop.f32.mrf.mxu3  ;;  %v626_v14 = vadd.f32 %v625_v12, %v544_v9 }
 0x1d1   : > { %v612_v16 = vpop.f32.mrf.mxu2  ;;  %v590_v17 = vadd.f32 %v589_v13, %v544_v9 }
 0x1d2   : > { %v613_v18 = vadd.f32 %v612_v16, %v554_v15  ;;  %636 = vst [vmem:[%s1085_s23 + $0x10] sm:$0xff] %v626_v14  ;;  %v609_v20 = vpop.f32.mrf.mxu0 }
 0x1d3   : > { %634 = vst [vmem:[%s1085_s23] sm:$0xff] %v590_v17  ;;  %v610_v21 = vadd.f32 %v609_v20, %v549_v19 }
 0x1d4   : > { %641 = vst [vmem:[%s1085_s23 + $0x38] sm:$0xff] %v613_v18 }
 0x1d5   : > { %638 = vst [vmem:[%s1085_s23 + $0x20] sm:$0xff] %v610_v21 }
 0x1d7   : > { %v627_v22 = vpop.f32.mrf.mxu1 }
 0x1d8   : > { %v591_v23 = vpop.f32.mrf.mxu3  ;;  %v628_v24 = vadd.f32 %v627_v22, %v549_v19 }
 0x1d9   : > { %v592_v25 = vadd.f32 %v591_v23, %v549_v19  ;;  %v614_v26 = vpop.f32.mrf.mxu2 }
 0x1da   : > { %639 = vst [vmem:[%s1085_s23 + $0x28] sm:$0xff] %v628_v24 }
 0x1db   : > { %637 = vst [vmem:[%s1085_s23 + $0x18] sm:$0xff] %v592_v25 }
 0x1e0   : > { %v594_v27 = vpop.f32.mrf.mxu3 }
 0x1e1   : > { %v595_v28 = vadd.f32 %v594_v27, %v554_v15 }
 0x1e3   : > { %640 = vst [vmem:[%s1085_s23 + $0x30] sm:$0xff] %v595_v28 }
 0x1e8   : > { %v596_v29 = vpop.f32.mrf.mxu3 }
 0x1f0   : > { %v630_v30 = vpop.f32.mrf.mxu3 }
 0x1f1   : > { %v631_v31 = vadd.f32 %v630_v30, %v554_v15 }
 0x1f3   : > { %642 = vst [vmem:[%s1085_s23 + $0x40] sm:$0xff] %v631_v31 }
 0x1f4   : > { %889 = shalt.err (!%p886_p3)
}
 0x1f5   : > { %s935_s16 = smov 384   ;;  %s936_s17 = smov 24  }
 0x1f6   : > { %809 = dma.vmem_to_hbm [thread:$0]  (%p1005_p5), %s657_s7, 1152, %s659_s8, %s644_s9, %s935_s16, %s935_s16, %s936_s17  }
 0x1f8   : > { %v632_v32 = vpop.f32.mrf.mxu3 }
 0x1f9 PF: > { %p815_p4 = scmp.ge.s32.totalorder %s924_s21, 2  ;;  %s673_s23 = sand.u32 1, %s912_s18  }
 0x1fa   : > { %s674_s25 = scalar_lea.sflag [#allocation4], %s673_s23 }
 0x1fb   : > { %p812_p7 = pnand %p815_p4, %p1009_p6 }
 0x1fd   : > { %p813_p8 = pneg %p812_p7 }
 0x1ff   : > { %907 = dma.done.wait (%p813_p8), %s674_s25, 1152  }
 0x200   : > { %909 = vsyncadd (%p813_p8), %s674_s25, 4294966144  ;;  %p15_p9 = scmp.ge.s32.totalorder %s992_s24, 4   ;;  %s1138_s18 = smov %s916_s19 }
 0x201   : > { %s1139_s19 = smov %s920_s20  ;;  %s1140_s20 = smov %s1003_s27 }
 0x202   : > { %s1141_s21 = smov %s992_s24  ;;  %17 = sbr.rel (!%p15_p9) target bundleno = 3 (0x3), region = 75 }
 0x207   :  { %680 = vsyncpa [#allocation4], 1 }
 0x208   :  { %682 = vsyncpa [#allocation4 + $0x1], 1 }

</bundles_post_ra>
